<compile_context>
chip_gen: v6e
topology: v6e:2x2x1
jax: 0.10.0
libtpu: 0.0.40
codegen_flags: <defaults>
</compile_context>

<pallas_src>
import jax
import jax.numpy as jnp
from jax.experimental import pallas as pl
from jax.experimental.pallas import tpu as pltpu


def _graph_conv2d_kernel(x_ref, adj_ref, w_ref, b_ref, o_ref):
    # x_ref  : (Bt, N, K*Din)   batch block of inputs
    # adj_ref: (Bt, N, N)       adjacency block
    # w_ref  : (K*Din, K*Dout)  block-diagonal kron(I_K, W^T)
    # b_ref  : (1, K*Dout)      bias tiled K times
    # o_ref  : (Bt, N, K*Dout)
    bt, n, kdin = x_ref.shape
    kdout = w_ref.shape[1]

    # ---- Linear over the last dim, as ONE merged MXU dot ---------------------------
    # Row-major merge of the non-minor dims (no relayout: N is sublane-aligned and
    # K*Din stays minor), so the MXU sees Bt*N rows instead of N.
    x_mat = x_ref[...].reshape(bt * n, kdin)
    y = jnp.dot(x_mat, w_ref[...], preferred_element_type=jnp.float32)
    y = (y + b_ref[...].astype(jnp.float32)).reshape(bt, n, kdout)

    # ---- Graph aggregation: out[b, i, :] = sum_j adj[b, i, j] * y[b, j, :] ---------
    adj = adj_ref[...].astype(jnp.float32)
    if n <= 16:
        # VPU path: N broadcast-FMA accumulations (VALU/XLU slots), so the tiny (N x N)
        # contraction does not serialize behind the Linear's MXU result FIFO.
        out = adj[:, :, 0:1] * y[:, 0:1, :]
        for j in range(1, n):
            out = out + adj[:, :, j:j + 1] * y[:, j:j + 1, :]
    else:
        # Batched MXU contraction for larger N.
        out = jnp.einsum('bij,bjd->bid', adj, y, preferred_element_type=jnp.float32)

    o_ref[...] = out.astype(o_ref.dtype)


def _pick_batch_block(b, n, target_rows=256):
    """Largest Bt dividing B with Bt*N near `target_rows` MXU rows (Bt=B for tiny B)."""
    bt = max(1, min(b, target_rows // max(n, 1)))
    while b % bt:
        bt -= 1
    return bt


def graph_conv2d(x, adj, weight, bias, *, compute_dtype=None):
    """GraphConv2D forward: einsum('bij,bjkl->bikl', adj, x @ W^T + b).

    x: [B, N, K, Din], adj: [B, N, N], weight: [Dout, Din], bias: [Dout].
    compute_dtype: optionally cast MXU operands (e.g. jnp.bfloat16); accumulation
    stays f32. Default None keeps full f32 (matches the 1e-5 reference check).
    """
    B, N, K, Din = x.shape
    Dout = weight.shape[0]
    out_dtype = x.dtype

    if compute_dtype is not None:
        x = x.astype(compute_dtype)
        adj = adj.astype(compute_dtype)
        weight = weight.astype(compute_dtype)
        bias = bias.astype(compute_dtype)

    # Free row-major views / tiny host-side prep (no extra HBM passes over x).
    x_slab = x.reshape(B, N, K * Din)                              # [B, N, K*Din]
    # Block-diagonal weight keeps both matmuls plain lane-dense 2-D at small K*Din /
    # K*Dout (K*Dout = 128 in the demo -> unmasked vst output stores).
    # TODO(synk): for Din/Dout >= 128 (or large K) switch to the dense
    # (Bt*N*K, Din) @ (Din, Dout) form to avoid the K^2 weight blow-up / zero FLOPs.
    w_big = jnp.kron(jnp.eye(K, dtype=weight.dtype), weight.T)     # (K*Din, K*Dout)
    b_rep = jnp.tile(bias, K).reshape(1, K * Dout)                 # (1, K*Dout)

    bt = _pick_batch_block(B, N)
    grid = (B // bt,)

    # VMEM budget derived from the real block footprint (double-buffered pipelined
    # operands + weight/bias + headroom), capped at 32 MiB for v7x's 64 MiB VMEM.
    in_item = jnp.dtype(x_slab.dtype).itemsize
    out_item = jnp.dtype(out_dtype).itemsize
    block_bytes = (
        (bt * N * K * Din + bt * N * N) * in_item
        + bt * N * K * Dout * out_item
        + (K * Din * K * Dout + K * Dout) * in_item
    )
    vmem_limit = int(min(32 * 1024 * 1024, max(16 * 1024 * 1024, 4 * block_bytes)))

    out_slab = pl.pallas_call(
        _graph_conv2d_kernel,
        out_shape=jax.ShapeDtypeStruct((B, N, K * Dout), out_dtype),
        grid_spec=pltpu.PrefetchScalarGridSpec(
            num_scalar_prefetch=0,
            grid=grid,
            in_specs=[
                pl.BlockSpec((bt, N, K * Din), lambda i: (i, 0, 0)),
                pl.BlockSpec((bt, N, N), lambda i: (i, 0, 0)),
                # Weight / bias are grid-invariant (constant block index); at these
                # sizes their revolving-buffer cost is negligible.
                # TODO(synk): at production Din/Dout, mark these pipeline_mode=
                # pl.Buffered(1) to reclaim the duplicate weight buffer in VMEM.
                pl.BlockSpec((K * Din, K * Dout), lambda i: (0, 0)),
                pl.BlockSpec((1, K * Dout), lambda i: (0, 0)),
            ],
            out_specs=pl.BlockSpec((bt, N, K * Dout), lambda i: (i, 0, 0)),
        ),
        compiler_params=pltpu.CompilerParams(
            # Batch-block axis is fully independent -> shard across TensorCores on
            # megacore parts (v7x); harmless on single-TC v5e/v6e.
            dimension_semantics=("parallel",),
            vmem_limit_bytes=vmem_limit,
        ),
    )(x_slab, adj, w_big, b_rep)

    return out_slab.reshape(B, N, K, Dout)   # free row-major view back to [B,N,K,Dout]


if __name__ == "__main__":
    B, N, K, Din, Dout = 2, 8, 4, 16, 32     # K*Dout = 128 -> lane-dense output slab
    key = jax.random.PRNGKey(0)
    kx, ka, kw, kb = jax.random.split(key, 4)

    x = jax.random.normal(kx, (B, N, K, Din), dtype=jnp.float32)
    adj = jax.random.normal(ka, (B, N, N), dtype=jnp.float32)

    # Deterministic nn.Linear-style init: U(-1/sqrt(Din), 1/sqrt(Din))
    bound = float(1.0 / (Din ** 0.5))
    weight = jax.random.uniform(kw, (Dout, Din), jnp.float32, -bound, bound)
    bias = jax.random.uniform(kb, (Dout,), jnp.float32, -bound, bound)

    out = jax.block_until_ready(graph_conv2d(x, adj, weight, bias))

    # Pure-JAX reference (mirrors the PyTorch forward)
    y_ref = jnp.einsum('bnkd,od->bnko', x, weight) + bias
    ref = jnp.einsum('bij,bjkl->bikl', adj, y_ref)

    assert out.shape == (B, N, K, Dout)
    assert jnp.allclose(out, ref, atol=1e-5, rtol=1e-5)
    print("KERNEL_OK")
</pallas_src>

<mosaic_0001>
module attributes {stable_mosaic.version = 11 : i64} {
  func.func @_graph_conv2d_kernel(%arg0: i32, %arg1: memref<2x8x64xf32, #tpu.memory_space<vmem>>, %arg2: memref<2x8x8xf32, #tpu.memory_space<vmem>>, %arg3: memref<64x128xf32, #tpu.memory_space<vmem>>, %arg4: memref<1x128xf32, #tpu.memory_space<vmem>>, %arg5: memref<2x8x128xf32, #tpu.memory_space<vmem>>) attributes {dimension_semantics = [#tpu.dimension_semantics<parallel>], iteration_bounds = array<i64: 1>, scalar_prefetch = 0 : i64, scratch_operands = 0 : i64, tpu.core_type = #tpu.core_type<tc>, window_params = [{transform_indices = @transform_0, window_bounds = array<i64: 2, 8, 64>}, {transform_indices = @transform_1, window_bounds = array<i64: 2, 8, 8>}, {pipeline_mode = #tpu.pipeline_mode<synchronous>, transform_indices = @transform_2, window_bounds = array<i64: 64, 128>}, {pipeline_mode = #tpu.pipeline_mode<synchronous>, transform_indices = @transform_3, window_bounds = array<i64: 1, 128>}, {transform_indices = @transform_4, window_bounds = array<i64: 2, 8, 128>}]} {
    %c0 = arith.constant 0 : index
    %c0_0 = arith.constant 0 : index
    %c0_1 = arith.constant 0 : index
    %0 = vector.load %arg1[%c0, %c0_0, %c0_1] : memref<2x8x64xf32, #tpu.memory_space<vmem>>, vector<2x8x64xf32>
    %1 = vector.shape_cast %0 : vector<2x8x64xf32> to vector<16x64xf32>
    %c0_2 = arith.constant 0 : index
    %c0_3 = arith.constant 0 : index
    %2 = vector.load %arg3[%c0_2, %c0_3] : memref<64x128xf32, #tpu.memory_space<vmem>>, vector<64x128xf32>
    %cst = arith.constant dense<0.000000e+00> : vector<16x128xf32>
    %3 = tpu.matmul %1, %2, %cst {dimension_numbers = #tpu.dot_dimension_numbers<[1], [0], [0], [1], [0, 0, 1, 1], [], []>} : vector<16x64xf32>, vector<64x128xf32>, vector<16x128xf32> -> vector<16x128xf32>
    %c0_4 = arith.constant 0 : index
    %c0_5 = arith.constant 0 : index
    %4 = vector.load %arg4[%c0_4, %c0_5] : memref<1x128xf32, #tpu.memory_space<vmem>>, vector<1x128xf32>
    %5 = vector.broadcast %4 : vector<1x128xf32> to vector<16x128xf32>
    %6 = arith.addf %3, %5 : vector<16x128xf32>
    %7 = vector.shape_cast %6 : vector<16x128xf32> to vector<2x8x128xf32>
    %c0_6 = arith.constant 0 : index
    %c0_7 = arith.constant 0 : index
    %c0_8 = arith.constant 0 : index
    %8 = vector.load %arg2[%c0_6, %c0_7, %c0_8] : memref<2x8x8xf32, #tpu.memory_space<vmem>>, vector<2x8x8xf32>
    %9 = vector.extract_strided_slice %8 {offsets = [0, 0, 0], sizes = [2, 8, 1], strides = [1, 1, 1]} : vector<2x8x8xf32> to vector<2x8x1xf32>
    %10 = vector.extract_strided_slice %7 {offsets = [0, 0, 0], sizes = [2, 1, 128], strides = [1, 1, 1]} : vector<2x8x128xf32> to vector<2x1x128xf32>
    %11 = vector.broadcast %9 : vector<2x8x1xf32> to vector<2x8x128xf32>
    %12 = vector.broadcast %10 : vector<2x1x128xf32> to vector<2x8x128xf32>
    %13 = arith.mulf %11, %12 : vector<2x8x128xf32>
    %14 = vector.extract_strided_slice %8 {offsets = [0, 0, 1], sizes = [2, 8, 1], strides = [1, 1, 1]} : vector<2x8x8xf32> to vector<2x8x1xf32>
    %15 = vector.extract_strided_slice %7 {offsets = [0, 1, 0], sizes = [2, 1, 128], strides = [1, 1, 1]} : vector<2x8x128xf32> to vector<2x1x128xf32>
    %16 = vector.broadcast %14 : vector<2x8x1xf32> to vector<2x8x128xf32>
    %17 = vector.broadcast %15 : vector<2x1x128xf32> to vector<2x8x128xf32>
    %18 = arith.mulf %16, %17 : vector<2x8x128xf32>
    %19 = arith.addf %13, %18 : vector<2x8x128xf32>
    %20 = vector.extract_strided_slice %8 {offsets = [0, 0, 2], sizes = [2, 8, 1], strides = [1, 1, 1]} : vector<2x8x8xf32> to vector<2x8x1xf32>
    %21 = vector.extract_strided_slice %7 {offsets = [0, 2, 0], sizes = [2, 1, 128], strides = [1, 1, 1]} : vector<2x8x128xf32> to vector<2x1x128xf32>
    %22 = vector.broadcast %20 : vector<2x8x1xf32> to vector<2x8x128xf32>
    %23 = vector.broadcast %21 : vector<2x1x128xf32> to vector<2x8x128xf32>
    %24 = arith.mulf %22, %23 : vector<2x8x128xf32>
    %25 = arith.addf %19, %24 : vector<2x8x128xf32>
    %26 = vector.extract_strided_slice %8 {offsets = [0, 0, 3], sizes = [2, 8, 1], strides = [1, 1, 1]} : vector<2x8x8xf32> to vector<2x8x1xf32>
    %27 = vector.extract_strided_slice %7 {offsets = [0, 3, 0], sizes = [2, 1, 128], strides = [1, 1, 1]} : vector<2x8x128xf32> to vector<2x1x128xf32>
    %28 = vector.broadcast %26 : vector<2x8x1xf32> to vector<2x8x128xf32>
    %29 = vector.broadcast %27 : vector<2x1x128xf32> to vector<2x8x128xf32>
    %30 = arith.mulf %28, %29 : vector<2x8x128xf32>
    %31 = arith.addf %25, %30 : vector<2x8x128xf32>
    %32 = vector.extract_strided_slice %8 {offsets = [0, 0, 4], sizes = [2, 8, 1], strides = [1, 1, 1]} : vector<2x8x8xf32> to vector<2x8x1xf32>
    %33 = vector.extract_strided_slice %7 {offsets = [0, 4, 0], sizes = [2, 1, 128], strides = [1, 1, 1]} : vector<2x8x128xf32> to vector<2x1x128xf32>
    %34 = vector.broadcast %32 : vector<2x8x1xf32> to vector<2x8x128xf32>
    %35 = vector.broadcast %33 : vector<2x1x128xf32> to vector<2x8x128xf32>
    %36 = arith.mulf %34, %35 : vector<2x8x128xf32>
    %37 = arith.addf %31, %36 : vector<2x8x128xf32>
    %38 = vector.extract_strided_slice %8 {offsets = [0, 0, 5], sizes = [2, 8, 1], strides = [1, 1, 1]} : vector<2x8x8xf32> to vector<2x8x1xf32>
    %39 = vector.extract_strided_slice %7 {offsets = [0, 5, 0], sizes = [2, 1, 128], strides = [1, 1, 1]} : vector<2x8x128xf32> to vector<2x1x128xf32>
    %40 = vector.broadcast %38 : vector<2x8x1xf32> to vector<2x8x128xf32>
    %41 = vector.broadcast %39 : vector<2x1x128xf32> to vector<2x8x128xf32>
    %42 = arith.mulf %40, %41 : vector<2x8x128xf32>
    %43 = arith.addf %37, %42 : vector<2x8x128xf32>
    %44 = vector.extract_strided_slice %8 {offsets = [0, 0, 6], sizes = [2, 8, 1], strides = [1, 1, 1]} : vector<2x8x8xf32> to vector<2x8x1xf32>
    %45 = vector.extract_strided_slice %7 {offsets = [0, 6, 0], sizes = [2, 1, 128], strides = [1, 1, 1]} : vector<2x8x128xf32> to vector<2x1x128xf32>
    %46 = vector.broadcast %44 : vector<2x8x1xf32> to vector<2x8x128xf32>
    %47 = vector.broadcast %45 : vector<2x1x128xf32> to vector<2x8x128xf32>
    %48 = arith.mulf %46, %47 : vector<2x8x128xf32>
    %49 = arith.addf %43, %48 : vector<2x8x128xf32>
    %50 = vector.extract_strided_slice %8 {offsets = [0, 0, 7], sizes = [2, 8, 1], strides = [1, 1, 1]} : vector<2x8x8xf32> to vector<2x8x1xf32>
    %51 = vector.extract_strided_slice %7 {offsets = [0, 7, 0], sizes = [2, 1, 128], strides = [1, 1, 1]} : vector<2x8x128xf32> to vector<2x1x128xf32>
    %52 = vector.broadcast %50 : vector<2x8x1xf32> to vector<2x8x128xf32>
    %53 = vector.broadcast %51 : vector<2x1x128xf32> to vector<2x8x128xf32>
    %54 = arith.mulf %52, %53 : vector<2x8x128xf32>
    %55 = arith.addf %49, %54 : vector<2x8x128xf32>
    %c0_9 = arith.constant 0 : index
    %c0_10 = arith.constant 0 : index
    %c0_11 = arith.constant 0 : index
    %56 = vector.load %arg5[%c0_9, %c0_10, %c0_11] : memref<2x8x128xf32, #tpu.memory_space<vmem>>, vector<2x8x128xf32>
    tpu.vector_store %arg5[%c0_9, %c0_10, %c0_11], %55 {strides = array<i32>} : memref<2x8x128xf32, #tpu.memory_space<vmem>>, vector<2x8x128xf32>,
    return
  }
  func.func @transform_0(%arg0: i32) -> (i32, i32, i32) {
    %c0_i32 = arith.constant 0 : i32
    %c0_i32_0 = arith.constant 0 : i32
    %c0_i32_1 = arith.constant 0 : i32
    return %arg0, %c0_i32, %c0_i32_0 : i32, i32, i32
  }
  func.func @transform_1(%arg0: i32) -> (i32, i32, i32) {
    %c0_i32 = arith.constant 0 : i32
    %c0_i32_0 = arith.constant 0 : i32
    %c0_i32_1 = arith.constant 0 : i32
    return %arg0, %c0_i32, %c0_i32_0 : i32, i32, i32
  }
  func.func @transform_2(%arg0: i32) -> (i32, i32) {
    %c0_i32 = arith.constant 0 : i32
    %c0_i32_0 = arith.constant 0 : i32
    %c0_i32_1 = arith.constant 0 : i32
    return %c0_i32, %c0_i32_0 : i32, i32
  }
  func.func @transform_3(%arg0: i32) -> (i32, i32) {
    %c0_i32 = arith.constant 0 : i32
    %c0_i32_0 = arith.constant 0 : i32
    %c0_i32_1 = arith.constant 0 : i32
    return %c0_i32, %c0_i32_0 : i32, i32
  }
  func.func @transform_4(%arg0: i32) -> (i32, i32, i32) {
    %c0_i32 = arith.constant 0 : i32
    %c0_i32_0 = arith.constant 0 : i32
    %c0_i32_1 = arith.constant 0 : i32
    return %arg0, %c0_i32, %c0_i32_0 : i32, i32, i32
  }
}

</mosaic_0001>

<bundles_post_ra>
// kernel: tpu_custom_call.1
= control target key start
LH: loop header
LB: loop body
LE: loop exit
PB: predicated region body
PF: predicated region fallthrough
CT: control target
= control target key end

     0   :  { %9 = vsyncpa [#allocation3], 0  ;;  %s553_s0 = inlined_call_operand.hbm [shape: f32[2,8,64], index: 0, kind: input, shape index: {}]   ;;  %s554_s1 = inlined_call_operand.hbm [shape: f32[2,8,8], index: 1, kind: input, shape index: {}]   ;;  %s555_s2 = inlined_call_operand.hbm [shape: f32[64,128], index: 2, kind: input, shape index: {}]   ;;  %s556_s3 = inlined_call_operand.vmem [shape: f32[1,128], index: 3, kind: input, shape index: {}]   ;;  %s557_s4 = inlined_call_operand.hbm [shape: f32[2,8,128], index: 4, kind: output, shape index: {}]  }
   0x1   :  { %10 = vsyncpa [#allocation6], 0 }
   0x2   :  { %11 = vsyncpa [#allocation4], 0  ;;  %s485_s15 = smov [#allocation5]   ;;  %s486_s17 = smov [#allocation2]  }
   0x3   :  { %s29_s16 = sshll.u32 %s485_s15, 4  ;;  %s17_s18 = sshll.u32 %s486_s17, 4  ;;  %s30_s16 = int_to_ptr.vmem [resolvable:$true] %s29_s16  ;;  %s18_s18 = int_to_ptr.vmem [resolvable:$true] %s17_s18 }
   0x4   :  { %s407_s19 = scalar_lea.vmem %s30_s16, 256  ;;  %p412_p1 = scmp.lt.s32.totalorder %s30_s16, %s30_s16 }
   0x5   :  { %p408_p0 = scmp.ne.s32.totalorder %s30_s16, %s407_s19  ;;  %p413_p2 = scmp.lt.s32.totalorder %s407_s19, %s407_s19 }
   0x7   :  { %p414_p3 = por %p413_p2, %p412_p1 }
   0x9   :  { %p415_p4 = pnand %p414_p3, %p408_p0 }
   0xb   :  { %418 = shalt.err (!%p415_p4)
}
   0xc   :  { %s487_s20 = smov 128   ;;  %s488_s21 = smov 8  }
   0xd   :  { %35 = dma.hbm_to_vmem [thread:$0]  %s554_s1, 256, %s30_s16, [#allocation6], %s487_s20, %s487_s20, %s488_s21  }
   0xe   :  { %s427_s24 = scalar_lea.vmem %s18_s18, 256  ;;  %p432_p6 = scmp.lt.s32.totalorder %s18_s18, %s18_s18 }
   0xf   :  { %p428_p5 = scmp.ne.s32.totalorder %s18_s18, %s427_s24  ;;  %p433_p7 = scmp.lt.s32.totalorder %s427_s24, %s427_s24 }
  0x11   :  { %p434_p8 = por %p433_p7, %p432_p6 }
  0x13   :  { %p435_p9 = pnand %p434_p8, %p428_p5 }
  0x15   :  { %438 = shalt.err (!%p435_p9)
}
  0x16   :  { %23 = dma.hbm_to_vmem [thread:$0]  %s553_s0, 256, %s18_s18, [#allocation3], %s487_s20, %s487_s20, %s488_s21  }
  0x17   :  { %s489_s27 = smov [#allocation7]  }
  0x18   :  { %s41_s28 = sshll.u32 %s489_s27, 4  ;;  %s42_s28 = int_to_ptr.vmem [resolvable:$true] %s41_s28 }
  0x19   :  { %s447_s29 = scalar_lea.vmem %s42_s28, 1024  ;;  %p452_p11 = scmp.lt.s32.totalorder %s42_s28, %s42_s28 }
  0x1a   :  { %p448_p10 = scmp.ne.s32.totalorder %s42_s28, %s447_s29  ;;  %p453_p12 = scmp.lt.s32.totalorder %s447_s29, %s447_s29 }
  0x1c   :  { %p454_p13 = por %p453_p12, %p452_p11 }
  0x1e   :  { %p455_p0 = pnand %p454_p13, %p448_p10 }
  0x20   :  { %458 = shalt.err (!%p455_p0)
}
  0x21   :  { %47 = dma.hbm_to_vmem [thread:$0]  %s555_s2, 1024, %s42_s28, [#allocation6], %s487_s20, %s487_s20, %s488_s21  }
  0x22   :  { %479 = dma.done.wait [#allocation3], 256  }
  0x23   :  { %480 = vsyncadd [#allocation3], 4294967040 }
  0x24   :  { %481 = dma.done.wait [#allocation6], 1280  }
  0x25   :  { %482 = vsyncadd [#allocation6], 4294966016  ;;  %v490_v0 = vmov 1   ;;  %v491_v1 = vmov 0   ;;  %v68_v2 = vld [vmem:[#allocation7 + $0x38] sm:$0xff]  ;;  %v67_v3 = vld [vmem:[#allocation7 + $0x30] sm:$0xff]  ;;  %v170_v28 = vlaneseq }
  0x26   :  { %387 = vset.pattern.permute.xlu1 %v490_v0  ;;  %386 = vset.pattern.permute.xlu0 %v491_v1  ;;  %vm76_vm0 = vcmask 523264   ;;  %v66_v4 = vld [vmem:[#allocation7 + $0x28] sm:$0xff]  ;;  %v59_v5 = vld [vmem:[#allocation2] sm:$0xff]  ;;  %v158_v6 = vld [vmem:[#allocation5] sm:$0xff]  ;;  %v492_v13 = vmov 2   ;;  %v493_v15 = vmov 3  }
  0x27   :  { %353 = vmatprep.subr.mxu0 %v68_v2  ;;  %369 = vmatprep.mubr.msk.f32.mxu0 %vm76_vm0, %v59_v5  ;;  %v65_v7 = vld [vmem:[#allocation7 + $0x20] sm:$0xff]  ;;  %v159_v8 = vld [vmem:[#allocation5 + $0x8] sm:$0xff]  ;;  %v63_v10 = vld [vmem:[#allocation7 + $0x10] sm:$0xff]  ;;  %v494_v16 = vmov 4   ;;  %v495_v17 = vmov 5   ;;  %v496_v18 = vmov 6  }
  0x28   :  { %354 = vmatpush3.msra.mxu0 %v68_v2  ;;  %181 = vperm.xlu1 %387, %v158_v6   ;;  %v64_v9 = vld [vmem:[#allocation7 + $0x18] sm:$0xff]  ;;  %v62_v11 = vld [vmem:[#allocation7 + $0x8] sm:$0xff]  ;;  %v61_v12 = vld [vmem:[#allocation7] sm:$0xff]  ;;  %v497_v19 = vmov 7   ;;  %v171_v30 = vshrl.u32 %v170_v28, 7 }
  0x29   :  { %355 = vmatprep.subr.mxu0 %v67_v3  ;;  %162 = vperm.xlu0 %386, %v158_v6   ;;  %v60_v14 = vld [vmem:[#allocation2 + $0x8] sm:$0xff]  ;;  %v340_v32 = vld [vmem:[%s556_s3] ss:$0 sm:$0xff]  ;;  %s498_s3 = smov [#allocation8]  }
  0x2a   :  { %356 = vmatpush3.msra.mxu0 %v67_v3  ;;  %v172_v33 = vsub.s32 0, %v171_v30  ;;  %v190_v34 = vsub.s32 1, %v171_v30  ;;  %v210_v36 = vsub.s32 2, %v171_v30  ;;  %v230_v40 = vsub.s32 3, %v171_v30  ;;  %s327_s5 = sshll.u32 %s498_s3, 4  ;;  %s328_s5 = int_to_ptr.vmem [resolvable:$true] %s327_s5 }
  0x2b   :  { %357 = vmatprep.subr.mxu0 %v66_v4  ;;  %v250_v45 = vsub.s32 4, %v171_v30  ;;  %v270_v49 = vsub.s32 5, %v171_v30  ;;  %v290_v55 = vsub.s32 6, %v171_v30  ;;  %v310_v63 = vsub.s32 7, %v171_v30  ;;  %s459_s6 = scalar_lea.vmem %s328_s5, 256  ;;  %p464_p2 = scmp.lt.s32.totalorder %s328_s5, %s328_s5 }
  0x2c   :  { %358 = vmatpush3.msra.mxu0 %v66_v4  ;;  %185 = vperm.xlu1 %387, %v159_v8   ;;  %p460_p1 = scmp.ne.s32.totalorder %s328_s5, %s459_s6  ;;  %p465_p3 = scmp.lt.s32.totalorder %s459_s6, %s459_s6 }
  0x2d   :  { %359 = vmatprep.subr.mxu0 %v65_v7  ;;  %167 = vperm.xlu0 %386, %v159_v8  }
  0x2e   :  { %360 = vmatpush3.msra.mxu0 %v65_v7  ;;  %p466_p4 = por %p465_p3, %p464_p2 }
  0x2f   :  { %361 = vmatprep.subr.mxu0 %v64_v9 }
  0x30   :  { %362 = vmatpush3.msra.mxu0 %v64_v9  ;;  %389 = vset.pattern.permute.xlu1 %v492_v13  ;;  %p467_p5 = pnand %p466_p4, %p460_p1 }
  0x31   :  { %363 = vmatprep.subr.mxu0 %v63_v10  ;;  %205 = vperm.xlu1 %389, %v159_v8  }
  0x32   :  { %364 = vmatpush3.msra.mxu0 %v63_v10  ;;  %388 = vset.pattern.permute.xlu0 %v492_v13 }
  0x33   :  { %365 = vmatprep.subr.mxu0 %v62_v11  ;;  %201 = vperm.xlu0 %388, %v158_v6  }
  0x34   :  { %366 = vmatpush3.msra.mxu0 %v62_v11 }
  0x35   :  { %367 = vmatprep.subr.mxu0 %v61_v12  ;;  %390 = vset.pattern.permute.xlu1 %v493_v15 }
  0x36   :  { %368 = vmatpush3.msra.mxu0 %v61_v12  ;;  %221 = vperm.xlu1 %390, %v158_v6  }
  0x37   :  { %370 = vmatmul.mubr.msk.f32.vlgmr.msra.gmra.mxu0 %vm76_vm0, %v60_v14  ;;  %391 = vset.pattern.permute.xlu0 %v493_v15 }
  0x38   :  { %225 = vperm.xlu0 %391, %v159_v8  }
  0x3a   :  { %392 = vset.pattern.permute.xlu1 %v494_v16 }
  0x3b   :  { %241 = vperm.xlu1 %392, %v158_v6  }
  0x3c   :  { %393 = vset.pattern.permute.xlu0 %v495_v17 }
  0x3d   :  { %261 = vperm.xlu0 %393, %v158_v6  }
  0x3f   :  { %245 = vperm.xlu1 %392, %v159_v8  }
  0x41   :  { %396 = vset.pattern.permute.xlu0 %v496_v18 }
  0x42   :  { %285 = vperm.xlu0 %396, %v159_v8  }
  0x43   :  { %394 = vset.pattern.permute.xlu1 %v495_v17 }
  0x44   :  { %265 = vperm.xlu1 %394, %v159_v8  }
  0x46   :  { %398 = vset.pattern.permute.xlu0 %v497_v19 }
  0x48   :  { %395 = vset.pattern.permute.xlu1 %v496_v18 }
  0x49   :  { %281 = vperm.xlu1 %395, %v158_v6  }
  0x4d   :  { %397 = vset.pattern.permute.xlu1 %v497_v19 }
  0x4e   :  { %301 = vperm.xlu1 %397, %v158_v6  }
  0x52   :  { %305 = vperm.xlu1 %397, %v159_v8  }
  0xa3   :  { %v182_v20 = vpop.permute.xlu1 %181 }
  0xa4   :  { %v163_v24 = vpop.permute.xlu0 %162 }
  0xa7   :  { %v186_v21 = vpop.permute.xlu1 %185 }
  0xa8   :  { %v168_v26 = vpop.permute.xlu0 %167 }
  0xac   :  { %v206_v22 = vpop.permute.xlu1 %205 }
  0xae   :  { %v202_v29 = vpop.permute.xlu0 %201 }
  0xb1   :  { %v222_v23 = vpop.permute.xlu1 %221 }
  0xb3   :  { %v226_v37 = vpop.permute.xlu0 %225 }
  0xb6   :  { %v242_v25 = vpop.permute.xlu1 %241 }
  0xb8   :  { %v262_v53 = vpop.permute.xlu0 %261 }
  0xba   :  { %v246_v27 = vpop.permute.xlu1 %245 }
  0xbd   :  { %v286_v9 = vpop.permute.xlu0 %285 }
  0xbf   :  { %v266_v31 = vpop.permute.xlu1 %265 }
  0xc4   :  { %v282_v41 = vpop.permute.xlu1 %281 }
  0xc9   :  { %v302_v59 = vpop.permute.xlu1 %301 }
  0xcd   :  { %v306_v16 = vpop.permute.xlu1 %305 }
  0xf7   :  { %v371_v35 = vpop.f32.mrf.mxu0 }
  0xf8   :  { %v155_v38 = vadd.f32 %v371_v35, %v340_v32 }
  0xf9   :  { %v149_v39 = vpop.f32.mrf.mxu0 }
  0xfa   :  { %v150_v42 = vadd.f32 %v340_v32, %v149_v39  ;;  %v177_v43 = vrot.slane %v155_v38, %v172_v33  ;;  %v195_v44 = vrot.slane %v155_v38, %v190_v34  ;;  %v215_v46 = vrot.slane %v155_v38, %v210_v36 }
  0xfb   :  { %v235_v52 = vrot.slane %v155_v38, %v230_v40  ;;  %v255_v58 = vrot.slane %v155_v38, %v250_v45  ;;  %v275_v2 = vrot.slane %v155_v38, %v270_v49  ;;  %v295_v8 = vrot.slane %v155_v38, %v290_v55 }
  0xfc   :  { %v173_v47 = vrot.slane %v150_v42, %v172_v33  ;;  %v179_v48 = vmul.f32 %v177_v43, %v168_v26  ;;  %v191_v50 = vrot.slane %v150_v42, %v190_v34  ;;  %v197_v51 = vmul.f32 %v195_v44, %v186_v21 }
  0xfd   :  { %v211_v54 = vrot.slane %v150_v42, %v210_v36  ;;  %v217_v57 = vmul.f32 %v215_v46, %v206_v22  ;;  %v231_v60 = vrot.slane %v150_v42, %v230_v40  ;;  %v237_v1 = vmul.f32 %v235_v52, %v226_v37 }
  0xfe   :  { %v199_v56 = vadd.f32 %v197_v51, %v179_v48  ;;  %v178_v61 = vmul.f32 %v173_v47, %v163_v24  ;;  %v196_v62 = vmul.f32 %v191_v50, %v182_v20  ;;  %v251_v3 = vrot.slane %v150_v42, %v250_v45 }
  0xff   :  { %v216_v5 = vmul.f32 %v211_v54, %v202_v29  ;;  %v257_v7 = vmul.f32 %v255_v58, %v246_v27  ;;  %v271_v10 = vrot.slane %v150_v42, %v270_v49  ;;  %v236_v12 = vmul.f32 %v231_v60, %v222_v23 }
 0x100   :  { %v219_v0 = vadd.f32 %v217_v57, %v199_v56  ;;  %v198_v4 = vadd.f32 %v196_v62, %v178_v61  ;;  %v315_v13 = vrot.slane %v155_v38, %v310_v63  ;;  %v277_v15 = vmul.f32 %v275_v2, %v266_v31 }
 0x101   :  { %v291_v17 = vrot.slane %v150_v42, %v290_v55  ;;  %v256_v19 = vmul.f32 %v251_v3, %v242_v25  ;;  %v297_v21 = vmul.f32 %v295_v8, %v286_v9  ;;  %v311_v22 = vrot.slane %v150_v42, %v310_v63 }
 0x102   :  { %v239_v6 = vadd.f32 %v237_v1, %v219_v0  ;;  %v218_v11 = vadd.f32 %v216_v5, %v198_v4  ;;  %v276_v26 = vmul.f32 %v271_v10, %v262_v53  ;;  %v317_v28 = vmul.f32 %v315_v13, %v306_v16 }
 0x103   :  { %v296_v27 = vmul.f32 %v291_v17, %v282_v41  ;;  %v316_v33 = vmul.f32 %v311_v22, %v302_v59 }
 0x104   :  { %v259_v14 = vadd.f32 %v257_v7, %v239_v6  ;;  %v238_v18 = vadd.f32 %v236_v12, %v218_v11 }
 0x106   :  { %v279_v20 = vadd.f32 %v277_v15, %v259_v14  ;;  %v258_v24 = vadd.f32 %v256_v19, %v238_v18 }
 0x108   :  { %v299_v29 = vadd.f32 %v297_v21, %v279_v20  ;;  %v278_v30 = vadd.f32 %v276_v26, %v258_v24 }
 0x10a   :  { %v319_v32 = vadd.f32 %v317_v28, %v299_v29  ;;  %v298_v23 = vadd.f32 %v296_v27, %v278_v30 }
 0x10c   :  { %321 = vst [vmem:[#allocation8 + $0x8] sm:$0xff] %v319_v32  ;;  %v318_v31 = vadd.f32 %v316_v33, %v298_v23 }
 0x10e   :  { %320 = vst [vmem:[#allocation8] sm:$0xff] %v318_v31 }
 0x10f   :  { %470 = shalt.err (!%p467_p5)
}
 0x110   :  { %333 = dma.vmem_to_hbm [thread:$0]  %s328_s5, 256, %s557_s4, [#allocation4], %s487_s20, %s487_s20, %s488_s21  }
 0x111   :  { %483 = dma.done.wait [#allocation4], 256  }
 0x112   :  { %484 = vsyncadd [#allocation4], 4294967040 }
 0x113   :  { %337 = vsyncpa [#allocation3], 1 }
 0x114   :  { %338 = vsyncpa [#allocation6], 1 }
 0x115   :  { %339 = vsyncpa [#allocation4], 1 }

</bundles_post_ra>
